<compile_context>
chip_gen: v6e
topology: v6e:2x2x1
jax: 0.10.0
libtpu: 0.0.40
codegen_flags: <defaults>
</compile_context>

<pallas_src>
import math
from functools import partial

import jax
import jax.numpy as jnp
from jax.experimental import pallas as pl
from jax.experimental.pallas import tpu as pltpu

EPS = 1e-5                      # nn.LayerNorm default
INV_SQRT2 = 1.0 / math.sqrt(2.0)


def _stem_kernel(xcol_ref, w1_ref, g1_ref, b1_ref, w2_ref, g2_ref, b2_ref,
                 o_ref, *, L2p, C1, C2):
    # xcol_ref: (2, B*L2p, 3*Cin) conv1 im2col rows; group 0 = even conv1
    #           output positions (2t), group 1 = odd positions (2t+1);
    #           rows ordered [batch][t] inside each group.
    # w1_ref:   (3*Cin, C1)   conv1 weight, (tap, cin) flattened
    # w2_ref:   (3, C1, C2p)  conv2 weight per tap, out-lane padded to C2p
    # g*/b*:    (1, C1) / (1, C2p) LayerNorm affine (padded lanes are 0)
    # o_ref:    (B*L2p, C2p)
    w1 = w1_ref[...]
    g1 = g1_ref[...]
    b1 = b1_ref[...]
    inv_c1 = 1.0 / C1

    def conv1_ln_gelu(xrows):
        y = jnp.dot(xrows, w1, preferred_element_type=jnp.float32)
        # single-pass LayerNorm statistics: var = E[x^2] - mu^2
        s1 = jnp.sum(y, axis=-1, keepdims=True)
        s2 = jnp.sum(y * y, axis=-1, keepdims=True)
        mu = s1 * inv_c1
        var = jnp.maximum(s2 * inv_c1 - mu * mu, 0.0)
        y = (y - mu) * jax.lax.rsqrt(var + EPS) * g1 + b1
        # exact-erf GELU (matches nn.GELU default)
        return 0.5 * y * (1.0 + jax.lax.erf(y * INV_SQRT2))

    ye = conv1_ln_gelu(xcol_ref[0])      # conv1 positions 2t      (B*L2p, C1)
    yo = conv1_ln_gelu(xcol_ref[1])      # conv1 positions 2t + 1  (B*L2p, C1)

    # conv2 tap k=0 reads conv1 position 2t-1: shift the odd rows down by one
    # sublane.  Batch groups are L2p-row aligned, so zeroing every L2p-th row
    # both removes the cross-batch leak of the roll and implements conv2's
    # left zero padding (position t=0).
    yo_shift = pltpu.roll(yo, shift=1, axis=0)
    row = jax.lax.broadcasted_iota(jnp.int32, yo_shift.shape, 0)
    tap0 = jnp.where(row % L2p == 0, 0.0, yo_shift)

    # conv2 as three accumulated MXU matmuls (no lane concat / XLU shuffles).
    w2d = w2_ref.dtype
    y2 = jnp.dot(tap0.astype(w2d), w2_ref[0], preferred_element_type=jnp.float32)
    y2 = y2 + jnp.dot(ye.astype(w2d), w2_ref[1], preferred_element_type=jnp.float32)
    y2 = y2 + jnp.dot(yo.astype(w2d), w2_ref[2], preferred_element_type=jnp.float32)

    # LayerNorm over the real C2 channels; padded lanes of y2 are exact zeros
    # (w2/g2/b2 padding is zero), so single-pass sums over all lanes are exact
    # and the padded output lanes come out as exact zeros.
    inv_c2 = 1.0 / C2
    s1 = jnp.sum(y2, axis=-1, keepdims=True)
    s2 = jnp.sum(y2 * y2, axis=-1, keepdims=True)
    mu2 = s1 * inv_c2
    var2 = jnp.maximum(s2 * inv_c2 - mu2 * mu2, 0.0)
    o_ref[...] = ((y2 - mu2) * jax.lax.rsqrt(var2 + EPS) * g2_ref[...]
                  + b2_ref[...]).astype(o_ref.dtype)


def _round_up(x, m):
    return ((x + m - 1) // m) * m


def _pick_batch_block(N, rows_per_batch, target_rows, min_steps=2):
    """Largest divisor B of N with B*rows_per_batch <= target_rows while
    keeping at least `min_steps` grid steps (pipelining / v7x second core)."""
    best = 1
    for b in range(1, N + 1):
        if N % b:
            continue
        if b * rows_per_batch > target_rows:
            continue
        if N >= min_steps and N // b < min_steps:
            continue
        best = b
    return best


def stem_layer_1d(x_ncl, w1_t, g1, b1, w2_t, g2, b2, *, target_rows=4096):
    """x_ncl: (N, Cin, L) like PyTorch. Returns (N, C2, L2) like PyTorch."""
    N, Cin, L = x_ncl.shape
    C1 = w1_t.shape[0]
    C2 = w2_t.shape[0]
    L1 = (L + 2 - 3) // 2 + 1          # conv1 out length (k=3, s=2, p=1)
    L2 = (L1 + 2 - 3) // 2 + 1         # conv2 out length
    # This kernel assumes an even conv1 output length (true for L % 4 == 0).
    assert L1 == 2 * L2, "stem_layer_1d kernel requires an even conv1 output length"
    L2p = _round_up(L2, 8)             # 8-sublane aligned rows per group
    C2p = _round_up(C2, 128)           # 128-lane aligned output channels
    K1 = 3 * Cin

    # bf16 MXU operands only when the caller already runs in bf16 (keeps the
    # f32 path bit-comparable to the PyTorch reference).
    mxu_dtype = jnp.bfloat16 if x_ncl.dtype == jnp.bfloat16 else jnp.float32

    # ---- wrapper-side im2col: only even/odd conv1 rows (no tap0 copies) ----
    x_nlc = jnp.transpose(x_ncl, (0, 2, 1))                       # (N, L, Cin)
    x_p = jnp.pad(x_nlc, ((0, 0), (1, 1), (0, 0)))                # conv1 pad=1
    cols = jnp.stack([x_p[:, k:k + 2 * L1 - 1:2, :] for k in range(3)], axis=2)
    x_col = cols.reshape(N, L1, K1)                               # (N, L1, 3*Cin)
    pad_t = ((0, 0), (0, L2p - L2), (0, 0))
    even = jnp.pad(x_col[:, 0::2, :], pad_t)                      # conv1 pos 2t
    odd = jnp.pad(x_col[:, 1::2, :], pad_t)                       # conv1 pos 2t+1
    x_rows = jnp.stack([even, odd], axis=0)                       # (2, N, L2p, K1)
    x_rows = x_rows.reshape(2, N * L2p, K1).astype(mxu_dtype)
    # TODO(synk): on v5e, move the im2col fully in-kernel (DMA a contiguous
    # (B, L_tile, Cin) slab and build taps with sublane rolls) to cut the
    # wrapper's extra HBM write+read of the expanded rows.

    # torch conv weight (Cout, Cin, K) -> (K, Cin, Cout); pad conv2 out lanes.
    w1m = jnp.transpose(w1_t, (2, 1, 0)).reshape(K1, C1).astype(mxu_dtype)
    w2m = jnp.transpose(w2_t, (2, 1, 0))                          # (3, C1, C2)
    w2m = jnp.pad(w2m, ((0, 0), (0, 0), (0, C2p - C2))).astype(mxu_dtype)
    g1r = g1.reshape(1, C1).astype(jnp.float32)
    b1r = b1.reshape(1, C1).astype(jnp.float32)
    g2r = jnp.pad(g2.astype(jnp.float32), (0, C2p - C2)).reshape(1, C2p)
    b2r = jnp.pad(b2.astype(jnp.float32), (0, C2p - C2)).reshape(1, C2p)

    R_in = 2 * L2p                                                # input rows/batch
    B = _pick_batch_block(N, R_in, target_rows)
    grid = (N // B,)
    # TODO(synk): add an L2-tile grid axis (with a 1-row odd-tap halo) so the
    # B=1, very-long-L case can still be tiled under v7x's 64 MiB VMEM.

    # VMEM budget: double-buffered in/out tiles + f32 temporaries (+ margin),
    # clamped to stay under v7x's 64 MiB physical VMEM.
    in_itemsize = jnp.dtype(mxu_dtype).itemsize
    out_itemsize = jnp.dtype(x_ncl.dtype).itemsize
    in_tile = B * R_in * _round_up(K1, 128) * in_itemsize
    out_tile = B * L2p * C2p * out_itemsize
    tmp_tile = B * L2p * max(_round_up(C1, 128), C2p) * 4
    vmem_limit = int(2 * in_tile + 2 * out_tile + 8 * tmp_tile + (8 << 20))
    vmem_limit = max(16 << 20, min(vmem_limit, 56 << 20))

    kernel = partial(_stem_kernel, L2p=L2p, C1=C1, C2=C2)

    out2d = pl.pallas_call(
        kernel,
        out_shape=jax.ShapeDtypeStruct((N * L2p, C2p), x_ncl.dtype),
        grid_spec=pltpu.PrefetchScalarGridSpec(
            num_scalar_prefetch=0,
            grid=grid,
            in_specs=[
                pl.BlockSpec((2, B * L2p, K1), lambda n: (0, n, 0)),
                pl.BlockSpec((K1, C1), lambda n: (0, 0)),
                pl.BlockSpec((1, C1), lambda n: (0, 0)),
                pl.BlockSpec((1, C1), lambda n: (0, 0)),
                pl.BlockSpec((3, C1, C2p), lambda n: (0, 0, 0)),
                pl.BlockSpec((1, C2p), lambda n: (0, 0)),
                pl.BlockSpec((1, C2p), lambda n: (0, 0)),
            ],
            out_specs=pl.BlockSpec((B * L2p, C2p), lambda n: (n, 0)),
        ),
        compiler_params=pltpu.CompilerParams(
            dimension_semantics=("parallel",),
            vmem_limit_bytes=vmem_limit),
    )(x_rows, w1m, g1r, b1r, w2m, g2r, b2r)

    # slice off row/lane padding, fused with the NLC -> NCL transpose
    out = out2d.reshape(N, L2p, C2p)[:, :L2, :C2]
    return jnp.transpose(out, (0, 2, 1))                          # (N, C2, L2)


def _ref_forward(x_ncl, w1_t, g1, b1, w2_t, g2, b2):
    """Pure-JAX reference mirroring the PyTorch module exactly."""
    def ln(x_nlc, g, b):
        mu = jnp.mean(x_nlc, -1, keepdims=True)
        var = jnp.mean((x_nlc - mu) ** 2, -1, keepdims=True)
        return (x_nlc - mu) * jax.lax.rsqrt(var + EPS) * g + b

    dn = ('NCH', 'OIH', 'NCH')
    y = jax.lax.conv_general_dilated(x_ncl, w1_t, (2,), [(1, 1)],
                                     dimension_numbers=dn)
    y = jnp.transpose(ln(jnp.transpose(y, (0, 2, 1)), g1, b1), (0, 2, 1))
    y = 0.5 * y * (1.0 + jax.lax.erf(y / jnp.sqrt(2.0)))
    y = jax.lax.conv_general_dilated(y, w2_t, (2,), [(1, 1)],
                                     dimension_numbers=dn)
    y = jnp.transpose(ln(jnp.transpose(y, (0, 2, 1)), g2, b2), (0, 2, 1))
    return y


if __name__ == "__main__":
    # StemLayer1D(in_chans=12, out_chans=96)
    N, Cin, L = 2, 12, 16
    C1, C2 = 96 // 2, 96

    key = jax.random.PRNGKey(0)
    k1, k2, k3, k4, k5, k6, kx = jax.random.split(key, 7)

    # deterministic synthetic parameters (shapes match nn.Conv1d / nn.LayerNorm)
    w1_t = jax.random.normal(k1, (C1, Cin, 3), jnp.float32) * 0.1   # conv1.weight
    w2_t = jax.random.normal(k2, (C2, C1, 3), jnp.float32) * 0.1    # conv2.weight
    g1 = 1.0 + 0.05 * jax.random.normal(k3, (C1,), jnp.float32)     # norm1.weight
    b1 = 0.05 * jax.random.normal(k4, (C1,), jnp.float32)           # norm1.bias
    g2 = 1.0 + 0.05 * jax.random.normal(k5, (C2,), jnp.float32)     # norm2.weight
    b2 = 0.05 * jax.random.normal(k6, (C2,), jnp.float32)           # norm2.bias

    x = jax.random.normal(kx, (N, Cin, L), jnp.float32)

    out = jax.block_until_ready(stem_layer_1d(x, w1_t, g1, b1, w2_t, g2, b2))
    ref = jax.block_until_ready(_ref_forward(x, w1_t, g1, b1, w2_t, g2, b2))

    assert out.shape == (N, C2, (L // 2) // 2), out.shape
    assert jnp.allclose(out, ref, atol=1e-3, rtol=1e-3), (
        float(jnp.max(jnp.abs(out - ref))))

    print("KERNEL_OK")
</pallas_src>

<mosaic_0001>
module attributes {stable_mosaic.version = 11 : i64} {
  func.func @_stem_kernel(%arg0: i32, %arg1: memref<2x8x36xf32, #tpu.memory_space<vmem>>, %arg2: memref<36x48xf32, #tpu.memory_space<vmem>>, %arg3: memref<1x48xf32, #tpu.memory_space<vmem>>, %arg4: memref<1x48xf32, #tpu.memory_space<vmem>>, %arg5: memref<3x48x128xf32, #tpu.memory_space<vmem>>, %arg6: memref<1x128xf32, #tpu.memory_space<vmem>>, %arg7: memref<1x128xf32, #tpu.memory_space<vmem>>, %arg8: memref<8x128xf32, #tpu.memory_space<vmem>>) attributes {dimension_semantics = [#tpu.dimension_semantics<parallel>], iteration_bounds = array<i64: 2>, scalar_prefetch = 0 : i64, scratch_operands = 0 : i64, tpu.core_type = #tpu.core_type<tc>, window_params = [{transform_indices = @transform_0, window_bounds = array<i64: 2, 8, 36>}, {pipeline_mode = #tpu.pipeline_mode<synchronous>, transform_indices = @transform_1, window_bounds = array<i64: 36, 48>}, {pipeline_mode = #tpu.pipeline_mode<synchronous>, transform_indices = @transform_2, window_bounds = array<i64: 1, 48>}, {pipeline_mode = #tpu.pipeline_mode<synchronous>, transform_indices = @transform_3, window_bounds = array<i64: 1, 48>}, {pipeline_mode = #tpu.pipeline_mode<synchronous>, transform_indices = @transform_4, window_bounds = array<i64: 3, 48, 128>}, {pipeline_mode = #tpu.pipeline_mode<synchronous>, transform_indices = @transform_5, window_bounds = array<i64: 1, 128>}, {pipeline_mode = #tpu.pipeline_mode<synchronous>, transform_indices = @transform_6, window_bounds = array<i64: 1, 128>}, {transform_indices = @transform_7, window_bounds = array<i64: 8, 128>}]} {
    %c0 = arith.constant 0 : index
    %c0_0 = arith.constant 0 : index
    %0 = vector.load %arg2[%c0, %c0_0] : memref<36x48xf32, #tpu.memory_space<vmem>>, vector<36x48xf32>
    %c0_1 = arith.constant 0 : index
    %c0_2 = arith.constant 0 : index
    %1 = vector.load %arg3[%c0_1, %c0_2] : memref<1x48xf32, #tpu.memory_space<vmem>>, vector<1x48xf32>
    %c0_3 = arith.constant 0 : index
    %c0_4 = arith.constant 0 : index
    %2 = vector.load %arg4[%c0_3, %c0_4] : memref<1x48xf32, #tpu.memory_space<vmem>>, vector<1x48xf32>
    %c0_5 = arith.constant 0 : index
    %c0_6 = arith.constant 0 : index
    %c0_7 = arith.constant 0 : index
    %3 = vector.load %arg1[%c0_5, %c0_6, %c0_7] : memref<2x8x36xf32, #tpu.memory_space<vmem>>, vector<1x8x36xf32>
    %4 = vector.shape_cast %3 : vector<1x8x36xf32> to vector<8x36xf32>
    %cst = arith.constant dense<0.000000e+00> : vector<8x48xf32>
    %5 = tpu.matmul %4, %0, %cst {dimension_numbers = #tpu.dot_dimension_numbers<[1], [0], [0], [1], [0, 0, 1, 1], [], []>} : vector<8x36xf32>, vector<36x48xf32>, vector<8x48xf32> -> vector<8x48xf32>
    %cst_8 = arith.constant dense<0.000000e+00> : vector<8xf32>
    %6 = vector.multi_reduction <add>, %5, %cst_8 [1] : vector<8x48xf32> to vector<8xf32>
    %7 = vector.shape_cast %6 : vector<8xf32> to vector<8x1xf32>
    %8 = arith.mulf %5, %5 : vector<8x48xf32>
    %cst_9 = arith.constant dense<0.000000e+00> : vector<8xf32>
    %9 = vector.multi_reduction <add>, %8, %cst_9 [1] : vector<8x48xf32> to vector<8xf32>
    %10 = vector.shape_cast %9 : vector<8xf32> to vector<8x1xf32>
    %cst_10 = arith.constant 0.020833334 : f32
    %11 = vector.broadcast %cst_10 : f32 to vector<8x1xf32>
    %12 = arith.mulf %7, %11 : vector<8x1xf32>
    %cst_11 = arith.constant 0.020833334 : f32
    %13 = vector.broadcast %cst_11 : f32 to vector<8x1xf32>
    %14 = arith.mulf %10, %13 : vector<8x1xf32>
    %15 = arith.mulf %12, %12 : vector<8x1xf32>
    %16 = arith.subf %14, %15 : vector<8x1xf32>
    %cst_12 = arith.constant 0.000000e+00 : f32
    %17 = vector.broadcast %cst_12 : f32 to vector<8x1xf32>
    %18 = arith.maximumf %16, %17 : vector<8x1xf32>
    %19 = vector.broadcast %12 : vector<8x1xf32> to vector<8x48xf32>
    %20 = arith.subf %5, %19 : vector<8x48xf32>
    %cst_13 = arith.constant 9.99999974E-6 : f32
    %21 = vector.broadcast %cst_13 : f32 to vector<8x1xf32>
    %22 = arith.addf %18, %21 : vector<8x1xf32>
    %23 = math.rsqrt %22 : vector<8x1xf32>
    %24 = vector.broadcast %23 : vector<8x1xf32> to vector<8x48xf32>
    %25 = arith.mulf %20, %24 : vector<8x48xf32>
    %26 = vector.broadcast %1 : vector<1x48xf32> to vector<8x48xf32>
    %27 = arith.mulf %25, %26 : vector<8x48xf32>
    %28 = vector.broadcast %2 : vector<1x48xf32> to vector<8x48xf32>
    %29 = arith.addf %27, %28 : vector<8x48xf32>
    %cst_14 = arith.constant 5.000000e-01 : f32
    %30 = vector.broadcast %cst_14 : f32 to vector<8x48xf32>
    %31 = arith.mulf %30, %29 : vector<8x48xf32>
    %cst_15 = arith.constant 0.707106769 : f32
    %32 = vector.broadcast %cst_15 : f32 to vector<8x48xf32>
    %33 = arith.mulf %29, %32 : vector<8x48xf32>
    %34 = math.erf %33 : vector<8x48xf32>
    %cst_16 = arith.constant 1.000000e+00 : f32
    %35 = vector.broadcast %cst_16 : f32 to vector<8x48xf32>
    %36 = arith.addf %35, %34 : vector<8x48xf32>
    %37 = arith.mulf %31, %36 : vector<8x48xf32>
    %c1 = arith.constant 1 : index
    %c0_17 = arith.constant 0 : index
    %c0_18 = arith.constant 0 : index
    %38 = vector.load %arg1[%c1, %c0_17, %c0_18] : memref<2x8x36xf32, #tpu.memory_space<vmem>>, vector<1x8x36xf32>
    %39 = vector.shape_cast %38 : vector<1x8x36xf32> to vector<8x36xf32>
    %cst_19 = arith.constant dense<0.000000e+00> : vector<8x48xf32>
    %40 = tpu.matmul %39, %0, %cst_19 {dimension_numbers = #tpu.dot_dimension_numbers<[1], [0], [0], [1], [0, 0, 1, 1], [], []>} : vector<8x36xf32>, vector<36x48xf32>, vector<8x48xf32> -> vector<8x48xf32>
    %cst_20 = arith.constant dense<0.000000e+00> : vector<8xf32>
    %41 = vector.multi_reduction <add>, %40, %cst_20 [1] : vector<8x48xf32> to vector<8xf32>
    %42 = vector.shape_cast %41 : vector<8xf32> to vector<8x1xf32>
    %43 = arith.mulf %40, %40 : vector<8x48xf32>
    %cst_21 = arith.constant dense<0.000000e+00> : vector<8xf32>
    %44 = vector.multi_reduction <add>, %43, %cst_21 [1] : vector<8x48xf32> to vector<8xf32>
    %45 = vector.shape_cast %44 : vector<8xf32> to vector<8x1xf32>
    %cst_22 = arith.constant 0.020833334 : f32
    %46 = vector.broadcast %cst_22 : f32 to vector<8x1xf32>
    %47 = arith.mulf %42, %46 : vector<8x1xf32>
    %cst_23 = arith.constant 0.020833334 : f32
    %48 = vector.broadcast %cst_23 : f32 to vector<8x1xf32>
    %49 = arith.mulf %45, %48 : vector<8x1xf32>
    %50 = arith.mulf %47, %47 : vector<8x1xf32>
    %51 = arith.subf %49, %50 : vector<8x1xf32>
    %cst_24 = arith.constant 0.000000e+00 : f32
    %52 = vector.broadcast %cst_24 : f32 to vector<8x1xf32>
    %53 = arith.maximumf %51, %52 : vector<8x1xf32>
    %54 = vector.broadcast %47 : vector<8x1xf32> to vector<8x48xf32>
    %55 = arith.subf %40, %54 : vector<8x48xf32>
    %cst_25 = arith.constant 9.99999974E-6 : f32
    %56 = vector.broadcast %cst_25 : f32 to vector<8x1xf32>
    %57 = arith.addf %53, %56 : vector<8x1xf32>
    %58 = math.rsqrt %57 : vector<8x1xf32>
    %59 = vector.broadcast %58 : vector<8x1xf32> to vector<8x48xf32>
    %60 = arith.mulf %55, %59 : vector<8x48xf32>
    %61 = vector.broadcast %1 : vector<1x48xf32> to vector<8x48xf32>
    %62 = arith.mulf %60, %61 : vector<8x48xf32>
    %63 = vector.broadcast %2 : vector<1x48xf32> to vector<8x48xf32>
    %64 = arith.addf %62, %63 : vector<8x48xf32>
    %cst_26 = arith.constant 5.000000e-01 : f32
    %65 = vector.broadcast %cst_26 : f32 to vector<8x48xf32>
    %66 = arith.mulf %65, %64 : vector<8x48xf32>
    %cst_27 = arith.constant 0.707106769 : f32
    %67 = vector.broadcast %cst_27 : f32 to vector<8x48xf32>
    %68 = arith.mulf %64, %67 : vector<8x48xf32>
    %69 = math.erf %68 : vector<8x48xf32>
    %cst_28 = arith.constant 1.000000e+00 : f32
    %70 = vector.broadcast %cst_28 : f32 to vector<8x48xf32>
    %71 = arith.addf %70, %69 : vector<8x48xf32>
    %72 = arith.mulf %66, %71 : vector<8x48xf32>
    %c1_i32 = arith.constant 1 : i32
    %73 = tpu.dynamic_rotate %72 by %c1_i32 dim 0 : vector<8x48xf32>, i32 -> vector<8x48xf32>
    %74 = tpu.iota {dimensions = array<i32: 0>} : vector<8x48xi32>
    %c8_i32 = arith.constant 8 : i32
    %c0_i32 = arith.constant 0 : i32
    %75 = arith.cmpi eq, %c8_i32, %c0_i32 : i32
    %c1_i32_29 = arith.constant 1 : i32
    %76 = arith.select %75, %c1_i32_29, %c8_i32 : i32
    %77 = vector.broadcast %76 : i32 to vector<8x48xi32>
    %78 = arith.remsi %74, %77 : vector<8x48xi32>
    %c0_i32_30 = arith.constant 0 : i32
    %79 = vector.broadcast %c0_i32_30 : i32 to vector<8x48xi32>
    %80 = arith.cmpi ne, %78, %79 : vector<8x48xi32>
    %c0_i32_31 = arith.constant 0 : i32
    %81 = vector.broadcast %c0_i32_31 : i32 to vector<8x48xi32>
    %82 = arith.cmpi slt, %78, %81 : vector<8x48xi32>
    %c0_i32_32 = arith.constant 0 : i32
    %83 = arith.cmpi slt, %76, %c0_i32_32 : i32
    %84 = vector.broadcast %83 : i1 to vector<8x48xi1>
    %85 = vector.broadcast %84 : vector<8x48xi1> to vector<8x48xi1>
    %86 = arith.xori %82, %85 : vector<8x48xi1>
    %87 = arith.andi %86, %80 : vector<8x48xi1>
    %88 = vector.broadcast %76 : i32 to vector<8x48xi32>
    %89 = arith.addi %78, %88 : vector<8x48xi32>
    %90 = arith.select %87, %89, %78 : vector<8x48xi1>, vector<8x48xi32>
    %c0_i32_33 = arith.constant 0 : i32
    %91 = vector.broadcast %c0_i32_33 : i32 to vector<8x48xi32>
    %92 = arith.cmpi eq, %90, %91 : vector<8x48xi32>
    %cst_34 = arith.constant 0.000000e+00 : f32
    %93 = vector.broadcast %cst_34 : f32 to vector<8x48xf32>
    %94 = arith.select %92, %93, %73 : vector<8x48xi1>, vector<8x48xf32>
    %c0_35 = arith.constant 0 : index
    %c0_36 = arith.constant 0 : index
    %c0_37 = arith.constant 0 : index
    %95 = vector.load %arg5[%c0_35, %c0_36, %c0_37] : memref<3x48x128xf32, #tpu.memory_space<vmem>>, vector<1x48x128xf32>
    %96 = vector.shape_cast %95 : vector<1x48x128xf32> to vector<48x128xf32>
    %cst_38 = arith.constant dense<0.000000e+00> : vector<8x128xf32>
    %97 = tpu.matmul %94, %96, %cst_38 {dimension_numbers = #tpu.dot_dimension_numbers<[1], [0], [0], [1], [0, 0, 1, 1], [], []>} : vector<8x48xf32>, vector<48x128xf32>, vector<8x128xf32> -> vector<8x128xf32>
    %c1_39 = arith.constant 1 : index
    %c0_40 = arith.constant 0 : index
    %c0_41 = arith.constant 0 : index
    %98 = vector.load %arg5[%c1_39, %c0_40, %c0_41] : memref<3x48x128xf32, #tpu.memory_space<vmem>>, vector<1x48x128xf32>
    %99 = vector.shape_cast %98 : vector<1x48x128xf32> to vector<48x128xf32>
    %cst_42 = arith.constant dense<0.000000e+00> : vector<8x128xf32>
    %100 = tpu.matmul %37, %99, %cst_42 {dimension_numbers = #tpu.dot_dimension_numbers<[1], [0], [0], [1], [0, 0, 1, 1], [], []>} : vector<8x48xf32>, vector<48x128xf32>, vector<8x128xf32> -> vector<8x128xf32>
    %101 = arith.addf %97, %100 : vector<8x128xf32>
    %c2 = arith.constant 2 : index
    %c0_43 = arith.constant 0 : index
    %c0_44 = arith.constant 0 : index
    %102 = vector.load %arg5[%c2, %c0_43, %c0_44] : memref<3x48x128xf32, #tpu.memory_space<vmem>>, vector<1x48x128xf32>
    %103 = vector.shape_cast %102 : vector<1x48x128xf32> to vector<48x128xf32>
    %cst_45 = arith.constant dense<0.000000e+00> : vector<8x128xf32>
    %104 = tpu.matmul %72, %103, %cst_45 {dimension_numbers = #tpu.dot_dimension_numbers<[1], [0], [0], [1], [0, 0, 1, 1], [], []>} : vector<8x48xf32>, vector<48x128xf32>, vector<8x128xf32> -> vector<8x128xf32>
    %105 = arith.addf %101, %104 : vector<8x128xf32>
    %cst_46 = arith.constant dense<0.000000e+00> : vector<8xf32>
    %106 = vector.multi_reduction <add>, %105, %cst_46 [1] : vector<8x128xf32> to vector<8xf32>
    %107 = vector.shape_cast %106 : vector<8xf32> to vector<8x1xf32>
    %108 = arith.mulf %105, %105 : vector<8x128xf32>
    %cst_47 = arith.constant dense<0.000000e+00> : vector<8xf32>
    %109 = vector.multi_reduction <add>, %108, %cst_47 [1] : vector<8x128xf32> to vector<8xf32>
    %110 = vector.shape_cast %109 : vector<8xf32> to vector<8x1xf32>
    %cst_48 = arith.constant 0.010416667 : f32
    %111 = vector.broadcast %cst_48 : f32 to vector<8x1xf32>
    %112 = arith.mulf %107, %111 : vector<8x1xf32>
    %cst_49 = arith.constant 0.010416667 : f32
    %113 = vector.broadcast %cst_49 : f32 to vector<8x1xf32>
    %114 = arith.mulf %110, %113 : vector<8x1xf32>
    %115 = arith.mulf %112, %112 : vector<8x1xf32>
    %116 = arith.subf %114, %115 : vector<8x1xf32>
    %cst_50 = arith.constant 0.000000e+00 : f32
    %117 = vector.broadcast %cst_50 : f32 to vector<8x1xf32>
    %118 = arith.maximumf %116, %117 : vector<8x1xf32>
    %119 = vector.broadcast %112 : vector<8x1xf32> to vector<8x128xf32>
    %120 = arith.subf %105, %119 : vector<8x128xf32>
    %cst_51 = arith.constant 9.99999974E-6 : f32
    %121 = vector.broadcast %cst_51 : f32 to vector<8x1xf32>
    %122 = arith.addf %118, %121 : vector<8x1xf32>
    %123 = math.rsqrt %122 : vector<8x1xf32>
    %124 = vector.broadcast %123 : vector<8x1xf32> to vector<8x128xf32>
    %125 = arith.mulf %120, %124 : vector<8x128xf32>
    %c0_52 = arith.constant 0 : index
    %c0_53 = arith.constant 0 : index
    %126 = vector.load %arg6[%c0_52, %c0_53] : memref<1x128xf32, #tpu.memory_space<vmem>>, vector<1x128xf32>
    %127 = vector.broadcast %126 : vector<1x128xf32> to vector<8x128xf32>
    %128 = arith.mulf %125, %127 : vector<8x128xf32>
    %c0_54 = arith.constant 0 : index
    %c0_55 = arith.constant 0 : index
    %129 = vector.load %arg7[%c0_54, %c0_55] : memref<1x128xf32, #tpu.memory_space<vmem>>, vector<1x128xf32>
    %130 = vector.broadcast %129 : vector<1x128xf32> to vector<8x128xf32>
    %131 = arith.addf %128, %130 : vector<8x128xf32>
    %c0_56 = arith.constant 0 : index
    %c0_57 = arith.constant 0 : index
    %132 = vector.load %arg8[%c0_56, %c0_57] : memref<8x128xf32, #tpu.memory_space<vmem>>, vector<8x128xf32>
    tpu.vector_store %arg8[%c0_56, %c0_57], %131 {strides = array<i32>} : memref<8x128xf32, #tpu.memory_space<vmem>>, vector<8x128xf32>,
    return
  }
  func.func @transform_0(%arg0: i32) -> (i32, i32, i32) {
    %c0_i32 = arith.constant 0 : i32
    %c0_i32_0 = arith.constant 0 : i32
    %c0_i32_1 = arith.constant 0 : i32
    return %c0_i32, %arg0, %c0_i32_0 : i32, i32, i32
  }
  func.func @transform_1(%arg0: i32) -> (i32, i32) {
    %c0_i32 = arith.constant 0 : i32
    %c0_i32_0 = arith.constant 0 : i32
    %c0_i32_1 = arith.constant 0 : i32
    return %c0_i32, %c0_i32_0 : i32, i32
  }
  func.func @transform_2(%arg0: i32) -> (i32, i32) {
    %c0_i32 = arith.constant 0 : i32
    %c0_i32_0 = arith.constant 0 : i32
    %c0_i32_1 = arith.constant 0 : i32
    return %c0_i32, %c0_i32_0 : i32, i32
  }
  func.func @transform_3(%arg0: i32) -> (i32, i32) {
    %c0_i32 = arith.constant 0 : i32
    %c0_i32_0 = arith.constant 0 : i32
    %c0_i32_1 = arith.constant 0 : i32
    return %c0_i32, %c0_i32_0 : i32, i32
  }
  func.func @transform_4(%arg0: i32) -> (i32, i32, i32) {
    %c0_i32 = arith.constant 0 : i32
    %c0_i32_0 = arith.constant 0 : i32
    %c0_i32_1 = arith.constant 0 : i32
    %c0_i32_2 = arith.constant 0 : i32
    return %c0_i32, %c0_i32_0, %c0_i32_1 : i32, i32, i32
  }
  func.func @transform_5(%arg0: i32) -> (i32, i32) {
    %c0_i32 = arith.constant 0 : i32
    %c0_i32_0 = arith.constant 0 : i32
    %c0_i32_1 = arith.constant 0 : i32
    return %c0_i32, %c0_i32_0 : i32, i32
  }
  func.func @transform_6(%arg0: i32) -> (i32, i32) {
    %c0_i32 = arith.constant 0 : i32
    %c0_i32_0 = arith.constant 0 : i32
    %c0_i32_1 = arith.constant 0 : i32
    return %c0_i32, %c0_i32_0 : i32, i32
  }
  func.func @transform_7(%arg0: i32) -> (i32, i32) {
    %c0_i32 = arith.constant 0 : i32
    %c0_i32_0 = arith.constant 0 : i32
    return %arg0, %c0_i32 : i32, i32
  }
}

</mosaic_0001>

<bundles_post_ra>
// kernel: tpu_custom_call.1
= control target key start
LH: loop header
LB: loop body
LE: loop exit
PB: predicated region body
PF: predicated region fallthrough
CT: control target
= control target key end

     0   :  { %s1615_s0 = inlined_call_operand.hbm [shape: f32[2,16,36], index: 0, kind: input, shape index: {}]   ;;  %s1616_s1 = inlined_call_operand.hbm [shape: f32[36,48], index: 1, kind: input, shape index: {}]   ;;  %s1617_s2 = inlined_call_operand.vmem [shape: f32[1,48], index: 2, kind: input, shape index: {}]   ;;  %s1618_s3 = inlined_call_operand.vmem [shape: f32[1,48], index: 3, kind: input, shape index: {}]   ;;  %s1619_s4 = inlined_call_operand.hbm [shape: f32[3,48,128], index: 4, kind: input, shape index: {}]   ;;  %s1620_s5 = inlined_call_operand.vmem [shape: f32[1,128], index: 5, kind: input, shape index: {}]   ;;  %s1621_s6 = inlined_call_operand.vmem [shape: f32[1,128], index: 6, kind: input, shape index: {}]   ;;  %s1622_s7 = inlined_call_operand.hbm [shape: f32[16,128], index: 7, kind: output, shape index: {}]  }
   0x1   :  { %1628 = sst [smem:[#allocation13_spill]] %s1616_s1 }
   0x2   :  { %12 = vsyncpa [#allocation3], 0 }
   0x3   :  { %14 = vsyncpa [#allocation3 + $0x1], 0 }
   0x4   :  { %15 = vsyncpa [#allocation6], 0 }
   0x5   :  { %16 = vsyncpa [#allocation4], 0 }
   0x6   :  { %18 = vsyncpa [#allocation4 + $0x1], 0  ;;  %s1349_s24 = smov 0   ;;  %s1351_s25 = smov 0  }
   0x7   :  { %s1353_s26 = smov 0   ;;  %s1355_s27 = smov 0  }
   0x8 LB: > { %s1370_s28 = sadd.s32 4294967295, %s1298_s27   ;;  %s936_s29 = sadd.s32 4294967294, %s1298_s27   ;;  %s1298_s27 = sphi %s1355_s27, %s1650_s27   ;;  %s1294_s26 = sphi %s1353_s26, %s1649_s26   ;;  %s1290_s25 = sphi %s1351_s25, %s1648_s25   ;;  %s1286_s24 = sphi %s1349_s24, %s1647_s24  }
   0x9   : > { %s1374_s30 = sadd.s32 1, %s1298_s27   ;;  %s31_s8 = sadd.s32 1, %s1294_s26 }
   0xa   : > { %s28_s9 = ssub.s32 %s1298_s27, %s1374_s30  ;;  %p38_p0 = scmp.ne.s32.totalorder %s1294_s26, %s1290_s25 }
   0xb   : > { %p29_p1 = scmp.eq.s32.totalorder %s28_s9, 0  ;;  %p39_p2 = scmp.eq.s32.totalorder %s1298_s27, 0 }
   0xc   : > { %p44_p3 = scmp.ne.s32.totalorder %s1290_s25, %s1286_s24  ;;  %p1624_p4 = scmp.eq.s32.totalorder %s1370_s28, 0 }
   0xd   : > { %s1386_s10 = scalar_select %p29_p1, %s1294_s26, %s31_s8  }
   0xe   : > { %p1388_p5 = por %p39_p2, %p38_p0  ;;  %p1394_p6 = por %p1624_p4, %p44_p3 }
   0xf   : > { %1629 = sst [smem:[#allocation12_spill]] %s1386_s10  ;;  %p194_p7 = scmp.eq.s32.totalorder %s1370_s28, 1 }
  0x10   : > { %s1631_s12 = scalar_select %p1394_p6, 1, 0 }
  0x11   : > { %p200_p8 = scmp.eq.s32.totalorder %s936_s29, 1  ;;  %p937_p9 = scmp.ge.s32.totalorder %s1298_s27, 1 }
  0x12   : > { %p207_p10 = scmp.lt.s32.totalorder %s1298_s27, 3  ;;  %p1401_p11 = por %p194_p7, %p38_p0 }
  0x13   : > { %p1405_p12 = por %p200_p8, %p44_p3  ;;  %s1300_s16 = smov [#allocation5]  }
  0x14   : > { %s1632_s13 = scalar_select %p1401_p11, 1, 0 }
  0x15   : > { %s1633_s14 = scalar_select %p1405_p12, 1, 0 }
  0x16   : > { %p1409_p13 = pnand %p937_p9, %p207_p10  ;;  %s219_s17 = sshll.u32 %s1300_s16, 4  ;;  %s220_s17 = int_to_ptr.vmem [resolvable:$true] %s219_s17 }
  0x17   : > { %p1097_p3 = scmp.lt.s32.totalorder %s1298_s27, 2  ;;  %s1301_s19 = smov [#allocation7]  }
  0x18   : > { %s1634_s15 = scalar_select %p1409_p13, 1, 0 }
  0x19   : > { %p1080_p1 = pneg %p1409_p13  ;;  %s238_s20 = sshll.u32 %s1301_s19, 4  ;;  %s239_s20 = int_to_ptr.vmem [resolvable:$true] %s238_s20 }
  0x1a   : > { %s1161_s21 = scalar_lea.vmem %s220_s17, 640  ;;  %p1169_p12 = scmp.lt.s32.totalorder %s220_s17, %s220_s17 }
  0x1b   : > { %p1417_p2 = pnand %p1080_p1, %p1624_p4  ;;  %p1162_p8 = scmp.ne.s32.totalorder %s220_s17, %s1161_s21 }
  0x1c   : > { %p1170_p11 = scmp.lt.s32.totalorder %s1161_s21, %s1161_s21 }
  0x1d   : > { %p1152_p7 = pneg %p1417_p2 }
  0x1e   : > { %p1171_p1 = por %p1170_p11, %p1169_p12 }
  0x1f   : > { %p1164_p9 = pnand %p1162_p8, %p1152_p7 }
  0x21   : > { %p1165_p10 = pneg %p1164_p9 }
  0x23   : > { %p1172_p4 = pnand %p1171_p1, %p1165_p10 }
  0x25   : > { %1175 = shalt.err (!%p1172_p4)
}
  0x26   : > { %s1625_s22 = smov 128   ;;  %s1303_s23 = smov 8  }
  0x27   : > { %s1636_s1 = sld [smem:[#allocation13_spill]]  ;;  %p1440_p8 = pnand %p1097_p3, %p1388_p5 }
  0x28   : > { %s1187_s16 = scalar_lea.vmem %s239_s20, 2304  ;;  %p1195_p9 = scmp.lt.s32.totalorder %s239_s20, %s239_s20 }
  0x29   : > { %p1188_p4 = scmp.ne.s32.totalorder %s239_s20, %s1187_s16  ;;  %p1196_p10 = scmp.lt.s32.totalorder %s1187_s16, %s1187_s16 }
  0x2b   : > { %p1190_p11 = pnand %p1188_p4, %p1152_p7  ;;  %p1197_p1 = por %p1196_p10, %p1195_p9 }
  0x2d   : > { %1083 = dma.hbm_to_vmem [thread:$0]  (!%p1417_p2), %s1636_s1, 640, %s220_s17, [#allocation6], %s1625_s22, %s1625_s22, %s1303_s23  }
  0x2e   : > { %p1191_p12 = pneg %p1190_p11 }
  0x30   : > { %p1198_p0 = pnand %p1197_p1, %p1191_p12 }
  0x32   : > { %1201 = shalt.err (!%p1198_p0)
}
  0x33   : > { %1086 = dma.hbm_to_vmem [thread:$0]  (!%p1417_p2), %s1619_s4, 2304, %s239_s20, [#allocation6], %s1625_s22, %s1625_s22, %s1303_s23  }
  0x34   : > { %s258_s19 = sand.u32 1, %s1294_s26   ;;  %s942_s29 = sshll.u32 %s1298_s27, 7 }
  0x35   : > { %s941_s21 = sshll.u32 %s258_s19, 4  ;;  %s1460_s1 = scalar_lea.hbm %s1615_s0, %s942_s29 }
  0x36   : > { %s262_s18 = scalar_lea.vmem [#allocation2], %s941_s21  ;;  %s1464_s11 = scalar_lea.sflag [#allocation3], %s258_s19 }
  0x37   : > { %s268_s10 = sshll.u32 %s262_s18, 4  ;;  %s1202_s17 = scalar_lea.hbm %s1460_s1, 256  ;;  %s1462_s10 = int_to_ptr.vmem [resolvable:$true] %s268_s10 }
  0x38   : > { %p1203_p5 = scmp.ne.s32.totalorder %s1460_s1, %s1202_s17  ;;  %p1204_p2 = pneg %p1440_p8 }
  0x39   : > { %s1207_s29 = scalar_lea.hbm %s1615_s0, 512  ;;  %p1208_p7 = scmp.lt.s32.totalorder %s1460_s1, %s1615_s0 }
  0x3a   : > { %p1205_p0 = pnand %p1204_p2, %p1203_p5  ;;  %p1209_p4 = scmp.lt.s32.totalorder %s1207_s29, %s1202_s17 }
  0x3c   : > { %p1206_p3 = pneg %p1205_p0  ;;  %p1210_p11 = por %p1209_p4, %p1208_p7 }
  0x3e   : > { %p1211_p12 = pnand %p1210_p11, %p1206_p3 }
  0x40   : > { %1214 = shalt.err (!%p1211_p12)
}
  0x41   : > { %s1215_s19 = scalar_lea.vmem %s1462_s10, 256  ;;  %s1304_s21 = smov [#allocation2]  }
  0x42   : > { %p1216_p9 = scmp.ne.s32.totalorder %s1462_s10, %s1215_s19  ;;  %s1220_s18 = sshll.u32 %s1304_s21, 4  ;;  %s1221_s18 = int_to_ptr.vmem [resolvable:$false] %s1220_s18 }
  0x43   : > { %s1222_s22 = scalar_lea.vmem %s1221_s18, 512  ;;  %p1223_p5 = scmp.lt.s32.totalorder %s1462_s10, %s1221_s18 }
  0x44   : > { %p1218_p10 = pnand %p1216_p9, %p1204_p2  ;;  %p1224_p0 = scmp.lt.s32.totalorder %s1222_s22, %s1215_s19 }
  0x46   : > { %p1219_p1 = pneg %p1218_p10  ;;  %p1225_p6 = por %p1224_p0, %p1223_p5 }
  0x48   : > { %p1226_p13 = pnand %p1225_p6, %p1219_p1 }
  0x4a   : > { %1229 = shalt.err (!%p1226_p13)
}
  0x4b   : > { %s1305_s17 = smov 256   ;;  %s1638_s20 = smov 128  }
  0x4c   : > { %1090 = dma.hbm_to_vmem [thread:$0]  (!%p1440_p8), %s1460_s1, 256, %s1462_s10, %s1464_s11, %s1305_s17, %s1638_s20, %s1303_s23  }
  0x4d   : > { %p1639_p2 = scmp.ne.s32.totalorder %s1634_s15, 0 }
  0x4e   : > { %s1490_s29 = sand.u32 (!%p1639_p2), 1, %s1290_s25   ;;  %p1640_p6 = scmp.ne.s32.totalorder (!%p1639_p2), %s1631_s12, 0 }
  0x4f   : > { %280 = sbr.rel (%p1639_p2) target bundleno = 875 (0x36b), region = 48  ;;  %s944_s8 = sshll.u32 (!%p1639_p2), %s1490_s29, 4 }
  0x50   : > { %s283_s16 = scalar_lea.sflag (!%p1639_p2), [#allocation3], %s1490_s29  ;;  %s1494_s19 = scalar_lea.vmem (!%p1639_p2), [#allocation2], %s944_s8 }
  0x54   : > { %1273 = dma.done.wait (%p1640_p6), %s283_s16, 256  }
  0x55   : > { %1275 = vsyncadd (%p1640_p6), %s283_s16, 4294967040  ;;  %p1641_p13 = scmp.eq.s32.totalorder %s1370_s28, 0 }
  0x57   : > { %1277 = dma.done.wait (%p1641_p13), [#allocation6], 2944   ;;  %p1642_p8 = pmov %p1641_p13 }
  0x58   : > { %v1306_v0 = vmov 0.0   ;;  %vm1307_vm0 = vmmov 0   ;;  %vm337_vm1 = vcmask 1043456   ;;  %v329_v1 = vld [vmem:[#allocation5 + $0x20] sm:$0xf]  ;;  %v328_v2 = vld [vmem:[#allocation5 + $0x18] sm:$0xff]  ;;  %v546_v63 = vlaneseq }
  0x59   : > { %1279 = vsyncadd (%p1642_p8), [#allocation6], 4294964352  ;;  %997 = vmatprep.subr.mxu1 %v1306_v0  ;;  %1007 = vmatprep.mubr.msk.f32.mxu1 %vm1307_vm0, %v1306_v0  ;;  %v327_v3 = vld [vmem:[#allocation5 + $0x10] sm:$0xff]  ;;  %v326_v4 = vld [vmem:[#allocation5 + $0x8] sm:$0xff]  ;;  %vm333_vm2 = vcmask 293888   ;;  %vm411_vm3 = vcmask 392192  }
  0x5a   : > { %1023 = vmatprep.subr.mxu0 %v1306_v0  ;;  %1035 = vmatprep.mubr.msk.f32.mxu0 %vm1307_vm0, %v1306_v0  ;;  %v325_v5 = vld [vmem:[#allocation5] sm:$0xff]  ;;  %v952_v7 = vld [vmem:[%s1494_s19 + $0x8] sm:$0xff]  ;;  %v572_v20 = vld [vmem:[#allocation7 + $0x48] sm:$0xff]  ;;  %s947_s23 = sshll.u32 %s1490_s29, 3  ;;  %s961_s22 = sshll.u32 %s1370_s28, 7 }
  0x5b   : > { %998 = vmatpush3.msk.msra.mxu1 %vm337_vm1, %v329_v1  ;;  %v332_v6 = vld [vmem:[%s1494_s19] sm:$0xff]  ;;  %v573_v19 = vld [vmem:[#allocation7 + $0x50] sm:$0xff]  ;;  %v571_v21 = vld [vmem:[#allocation7 + $0x40] sm:$0xff]  ;;  %s324_s17 = scalar_lea.vmem [#allocation8], %s947_s23  ;;  %s845_s19 = scalar_lea.hbm %s1622_s7, %s961_s22 }
  0x5c   : > { %999 = vmatprep.subr.mxu1 %v1306_v0  ;;  %v574_v18 = vld [vmem:[#allocation7 + $0x58] sm:$0xff]  ;;  %v569_v23 = vld [vmem:[#allocation7 + $0x30] sm:$0xff]  ;;  %v567_v24 = vld [vmem:[#allocation7 + $0x28] sm:$0xff]  ;;  %s847_s20 = sshll.u32 %s324_s17, 4  ;;  %s834_s1 = scalar_lea.sflag [#allocation4], %s1490_s29  ;;  %s848_s20 = int_to_ptr.vmem [resolvable:$true] %s847_s20 }
  0x5d   : > { %1000 = vmatpush3.msra.mxu1 %v328_v2  ;;  %1024 = vmatpush3.msra.mxu0 %v574_v18  ;;  %v570_v22 = vld [vmem:[#allocation7 + $0x38] sm:$0xff]  ;;  %v566_v25 = vld [vmem:[#allocation7 + $0x20] sm:$0xff]  ;;  %v564_v27 = vld [vmem:[#allocation7 + $0x10] sm:$0xff]  ;;  %s1230_s10 = scalar_lea.vmem %s848_s20, 128  ;;  %p1643_p7 = scmp.ne.s32.totalorder %s1632_s13, 0 }
  0x5e   : > { %1001 = vmatprep.subr.mxu1 %v1306_v0  ;;  %1025 = vmatprep.subr.mxu0 %v1306_v0  ;;  %v565_v26 = vld [vmem:[#allocation7 + $0x18] sm:$0xff]  ;;  %v563_v28 = vld [vmem:[#allocation7 + $0x8] sm:$0xff]  ;;  %v562_v29 = vld [vmem:[#allocation7] sm:$0xff]  ;;  %p1231_p3 = scmp.ne.s32.totalorder %s848_s20, %s1230_s10  ;;  %s1308_s12 = smov [#allocation8]  }
  0x5f   : > { %1002 = vmatpush3.msra.mxu1 %v327_v3  ;;  %1026 = vmatpush3.msra.mxu0 %v573_v19  ;;  %v950_v48 = vld [vmem:[%s1617_s2] ss:$0 sm:$0xff]  ;;  %s1234_s15 = sshll.u32 %s1308_s12, 4  ;;  %s1235_s15 = int_to_ptr.vmem [resolvable:$false] %s1234_s15 }
  0x60   : > { %1003 = vmatprep.subr.mxu1 %v1306_v0  ;;  %1027 = vmatprep.subr.mxu0 %v1306_v0  ;;  %v951_v50 = vld [vmem:[%s1618_s3] ss:$0 sm:$0xff]  ;;  %p1232_p4 = pnand %p1231_p3, %p1643_p7  ;;  %s1236_s28 = scalar_lea.vmem %s1235_s15, 256 }
  0x61   : > { %1004 = vmatpush3.msra.mxu1 %v326_v4  ;;  %1028 = vmatpush3.msra.mxu0 %v572_v20  ;;  %p1237_p12 = scmp.lt.s32.totalorder %s848_s20, %s1235_s15  ;;  %p1238_p9 = scmp.lt.s32.totalorder %s1236_s28, %s1230_s10 }
  0x62   : > { %1005 = vmatprep.subr.mxu1 %v1306_v0  ;;  %1029 = vmatprep.subr.mxu0 %v1306_v0  ;;  %p1233_p11 = pneg %p1232_p4 }
  0x63   : > { %1006 = vmatpush3.msra.mxu1 %v325_v5  ;;  %1030 = vmatpush3.msra.mxu0 %v571_v21  ;;  %p1239_p10 = por %p1238_p9, %p1237_p12 }
  0x64   : > { %1008 = vmatmul.mubr.msk.f32.vlgmr.msra.gmra.mxu1 %vm333_vm2, %v332_v6  ;;  %1010 = vmatprep.subr.mxu1 %v1306_v0  ;;  %v724_v6 = vld [vmem:[#allocation7 + $0x70] sm:$0xff] }
  0x65   : > { %1011 = vmatpush3.msk.msra.mxu1 %vm337_vm1, %v329_v1  ;;  %1020 = vmatprep.mubr.msk.f32.mxu1 %vm1307_vm0, %v1306_v0  ;;  %p1240_p1 = pnand %p1239_p10, %p1233_p11 }
  0x66   : > { %1012 = vmatprep.subr.mxu1 %v1306_v0  ;;  %1031 = vmatprep.subr.mxu0 %v1306_v0 }
  0x67   : > { %1013 = vmatpush3.msra.mxu1 %v328_v2  ;;  %1032 = vmatpush3.msra.mxu0 %v570_v22  ;;  %v727_v2 = vld [vmem:[#allocation7 + $0x88] sm:$0xff] }
  0x68   : > { %1014 = vmatprep.subr.mxu1 %v1306_v0  ;;  %1033 = vmatprep.subr.mxu0 %v1306_v0 }
  0x69   : > { %1015 = vmatpush3.msra.mxu1 %v327_v3  ;;  %1034 = vmatpush3.msra.mxu0 %v569_v23  ;;  %v726_v3 = vld [vmem:[#allocation7 + $0x80] sm:$0xff] }
  0x6a   : > { %1016 = vmatprep.subr.mxu1 %v1306_v0  ;;  %1053 = vmatprep.subr.mxu0 %v1306_v0 }
  0x6b   : > { %1017 = vmatpush3.msra.mxu1 %v326_v4  ;;  %v547_v4 = vshrl.u32 %v546_v63, 7 }
  0x6c   : > { %1018 = vmatprep.subr.mxu1 %v1306_v0 }
  0x6d   : > { %1019 = vmatpush3.msra.mxu1 %v325_v5  ;;  %v725_v5 = vld [vmem:[#allocation7 + $0x78] sm:$0xff] }
  0x6e   : > { %1021 = vmatmul.mubr.msk.f32.vlgmr.msra.gmra.mxu1 %vm333_vm2, %v952_v7  ;;  %1038 = vmatprep.subr.mxu1 %v1306_v0 }
  0x6f   : > { %1050 = vmatprep.mubr.msk.f32.mxu1 %vm1307_vm0, %v1306_v0  ;;  %1039 = vmatpush3.msra.mxu1 %v567_v24 }
  0x70   : > { %1040 = vmatprep.subr.mxu1 %v1306_v0 }
  0x71   : > { %1041 = vmatpush3.msra.mxu1 %v566_v25 }
  0x72   : > { %1042 = vmatprep.subr.mxu1 %v1306_v0 }
  0x73   : > { %1043 = vmatpush3.msra.mxu1 %v565_v26 }
  0x74   : > { %1044 = vmatprep.subr.mxu1 %v1306_v0 }
  0x75   : > { %1045 = vmatpush3.msra.mxu1 %v564_v27 }
  0x76   : > { %1046 = vmatprep.subr.mxu1 %v1306_v0 }
  0x77   : > { %1047 = vmatpush3.msra.mxu1 %v563_v28 }
  0x78   : > { %1048 = vmatprep.subr.mxu1 %v1306_v0 }
  0x79   : > { %1049 = vmatpush3.msra.mxu1 %v562_v29 }
 0x124   : > { %v1530_v8 = vpop.f32.mrf.mxu1 }
 0x125   : > { %v412_v9 = vsel %vm411_vm3, %v1530_v8, 0.0  ;;  %v415_v10 = vmul.f32 %v1530_v8, %v1530_v8 }
 0x126   : > { %413 = vadd.xlane.f32.xlu0 %v412_v9  ;;  %v1009_v11 = vpop.f32.mrf.mxu1  ;;  %v723_v9 = vld [vmem:[#allocation7 + $0x68] sm:$0xff] }
 0x127   : > { %v416_v12 = vsel %vm411_vm3, %v415_v10, 0.0 }
 0x12a   : > { %417 = vadd.xlane.f32.xlu0 %v416_v12  ;;  %v722_v12 = vld [vmem:[#allocation7 + $0x60] sm:$0xff] }
 0x12e   : > { %v1537_v13 = vpop.f32.mrf.mxu1 }
 0x12f   : > { %v522_v14 = vsel %vm411_vm3, %v1537_v13, 0.0  ;;  %v525_v15 = vmul.f32 %v1537_v13, %v1537_v13 }
 0x130   : > { %523 = vadd.xlane.f32.xlu1 %v522_v14  ;;  %v1022_v16 = vpop.f32.mrf.mxu1 }
 0x131   : > { %v526_v17 = vsel %vm411_vm3, %v525_v15, 0.0 }
 0x134   : > { %527 = vadd.xlane.f32.xlu1 %v526_v17 }
 0x1af   : > { %v414_v30 = vpop.xlane.xlu0 %413 }
 0x1b0   : > { %v419_v31 = vmul.f32 0.020833334, %v414_v30 }
 0x1b2   : > { %v421_v32 = vmul.f32 %v419_v31, %v419_v31  ;;  %v424_v46 = vsub.f32 %v1530_v8, %v419_v31  ;;  %v552_v8 = vand.u32 7, %v547_v4 }
 0x1b3   : > { %v418_v33 = vpop.xlane.xlu0 %417 }
 0x1b4   : > { %v420_v34 = vmul.f32 0.020833334, %v418_v33  ;;  %vm560_vm4 = vcmp.eq.s32.totalorder %v552_v8, 0 }
 0x1b6   : > { %v422_v35 = vsub.f32 %v420_v34, %v421_v32  ;;  %v958_v34 = vld [vmem:[%s1620_s5] ss:$0 sm:$0xff] }
 0x1b8   : > { %v423_v36 = vmax.f32 %v422_v35, 0.0 }
 0x1b9   : > { %v524_v37 = vpop.xlane.xlu1 %523 }
 0x1ba   : > { %v425_v38 = vadd.f32 1e-05, %v423_v36  ;;  %v529_v39 = vmul.f32 0.020833334, %v524_v37  ;;  %v959_v36 = vld [vmem:[%s1621_s6] ss:$0 sm:$0xff] }
 0x1bc   : > { %1140 = vrsqrt.f32 %v425_v38  ;;  %v531_v41 = vmul.f32 %v529_v39, %v529_v39  ;;  %v534_v54 = vsub.f32 %v1537_v13, %v529_v39 }
 0x1bd   : > { %v528_v40 = vpop.xlane.xlu1 %527 }
 0x1be   : > { %v530_v42 = vmul.f32 0.020833334, %v528_v40 }
 0x1c0   : > { %v532_v43 = vsub.f32 %v530_v42, %v531_v41 }
 0x1c2   : > { %v533_v44 = vmax.f32 %v532_v43, 0.0 }
 0x1c4   : > { %v535_v45 = vadd.f32 1e-05, %v533_v44 }
 0x1c6   : > { %1142 = vrsqrt.f32 %v535_v45 }
 0x1c9   : > { %v1141_v47 = vpop.eup %1140 }
 0x1ca   : > { %v427_v49 = vmul.f32 %v1141_v47, %v424_v46 }
 0x1cc   : > { %v434_v51 = vmul.f32 %v950_v48, %v427_v49 }
 0x1ce   : > { %v441_v52 = vadd.f32 %v951_v50, %v434_v51 }
 0x1d0   : > { %v443_v53 = vmul.f32 0.70710677, %v441_v52  ;;  %v442_v61 = vmul.f32 0.5, %v441_v52 }
 0x1d2   : > { %1144 = verf.f32 %v443_v53 }
 0x1d3   : > { %v1143_v55 = vpop.eup %1142 }
 0x1d4   : > { %v537_v56 = vmul.f32 %v1143_v55, %v534_v54 }
 0x1d6   : > { %v538_v57 = vmul.f32 %v950_v48, %v537_v56 }
 0x1d8   : > { %v539_v58 = vadd.f32 %v951_v50, %v538_v57 }
 0x1da   : > { %v541_v59 = vmul.f32 0.70710677, %v539_v58  ;;  %v540_v10 = vmul.f32 0.5, %v539_v58 }
 0x1dc   : > { %1146 = verf.f32 %v541_v59 }
 0x1df   : > { %v1145_v60 = vpop.eup %1144 }
 0x1e0   : > { %v445_v62 = vadd.f32 1.0, %v1145_v60 }
 0x1e2   : > { %v446_v1 = vmul.f32 %v445_v62, %v442_v61 }
 0x1e4   : > { %1036 = vmatmul.mubr.msk.f32.vlgmr.msra.gmra.mxu0 %vm411_vm3, %v446_v1 }
 0x1e5   : > { %1054 = vmatpush3.msra.mxu0 %v727_v2  ;;  %1065 = vmatprep.mubr.msk.f32.mxu0 %vm1307_vm0, %v1306_v0 }
 0x1e6   : > { %1055 = vmatprep.subr.mxu0 %v1306_v0 }
 0x1e7   : > { %1056 = vmatpush3.msra.mxu0 %v726_v3 }
 0x1e8   : > { %1057 = vmatprep.subr.mxu0 %v1306_v0 }
 0x1e9   : > { %v1147_v7 = vpop.eup %1146  ;;  %1058 = vmatpush3.msra.mxu0 %v725_v5 }
 0x1ea   : > { %1059 = vmatprep.subr.mxu0 %v1306_v0  ;;  %v543_v11 = vadd.f32 1.0, %v1147_v7 }
 0x1eb   : > { %1060 = vmatpush3.msra.mxu0 %v724_v6 }
 0x1ec   : > { %1061 = vmatprep.subr.mxu0 %v1306_v0  ;;  %v544_v13 = vmul.f32 %v543_v11, %v540_v10 }
 0x1ed   : > { %1062 = vmatpush3.msra.mxu0 %v723_v9 }
 0x1ee   : > { %1063 = vmatprep.subr.mxu0 %v1306_v0  ;;  %v545_v14 = vrot.slane %v544_v13, 7 }
 0x1ef   : > { %1064 = vmatpush3.msra.mxu0 %v722_v12 }
 0x1f0   : > { %1066 = vmatmul.mubr.msk.f32.vlgmr.msra.gmra.mxu0 %vm411_vm3, %v544_v13  ;;  %v561_v15 = vsel %vm560_vm4, 0.0, %v545_v14 }
 0x1f1   : > { %1051 = vmatmul.mubr.msk.f32.vlgmr.msra.gmra.mxu1 %vm411_vm3, %v561_v15 }
 0x2a4   : > { %v644_v16 = vpop.f32.mrf.mxu0 }
 0x2a6   : > { %v1037_v17 = vpop.f32.mrf.mxu0 }
 0x2b0   : > { %v797_v18 = vpop.f32.mrf.mxu0 }
 0x2b1   : > { %v717_v19 = vpop.f32.mrf.mxu1 }
 0x2b2   : > { %v718_v20 = vadd.f32 %v717_v19, %v644_v16  ;;  %v1067_v21 = vpop.f32.mrf.mxu0 }
 0x2b3   : > { %v1052_v22 = vpop.f32.mrf.mxu1 }
 0x2b4   : > { %v801_v23 = vadd.f32 %v797_v18, %v718_v20 }
 0x2b6   : > { %802 = vadd.xlane.f32.xlu0 %v801_v23  ;;  %v804_v24 = vmul.f32 %v801_v23, %v801_v23 }
 0x2b8   : > { %805 = vadd.xlane.f32.xlu1 %v804_v24 }
 0x33f   : > { %v803_v0 = vpop.xlane.xlu0 %802 }
 0x340   : > { %v807_v25 = vmul.f32 0.010416667, %v803_v0 }
 0x341   : > { %v806_v26 = vpop.xlane.xlu1 %805 }
 0x342   : > { %v809_v27 = vmul.f32 %v807_v25, %v807_v25  ;;  %v808_v28 = vmul.f32 0.010416667, %v806_v26  ;;  %v812_v32 = vsub.f32 %v801_v23, %v807_v25 }
 0x344   : > { %v810_v29 = vsub.f32 %v808_v28, %v809_v27 }
 0x346   : > { %v811_v30 = vmax.f32 %v810_v29, 0.0 }
 0x348   : > { %v813_v31 = vadd.f32 1e-05, %v811_v30 }
 0x34a   : > { %1148 = vrsqrt.f32 %v813_v31 }
 0x357   : > { %v1149_v33 = vpop.eup %1148 }
 0x358   : > { %v815_v35 = vmul.f32 %v1149_v33, %v812_v32 }
 0x35a   : > { %v823_v37 = vmul.f32 %v958_v34, %v815_v35 }
 0x35c   : > { %v831_v38 = vadd.f32 %v959_v36, %v823_v37 }
 0x35e   : > { %832 = vst [vmem:[%s324_s17] sm:$0xff] %v831_v38 }
 0x35f   : > { %1243 = shalt.err (!%p1240_p1)
}
 0x360   : > { %s1244_s23 = scalar_lea.hbm %s845_s19, 128  ;;  %s1248_s11 = scalar_lea.hbm %s1622_s7, 256 }
 0x361   : > { %p1245_p5 = scmp.ne.s32.totalorder %s845_s19, %s1244_s23  ;;  %p1249_p6 = scmp.lt.s32.totalorder %s845_s19, %s1622_s7 }
 0x362   : > { %p1250_p13 = scmp.lt.s32.totalorder %s1248_s11, %s1244_s23 }
 0x363   : > { %p1246_p0 = pnand %p1245_p5, %p1643_p7 }
 0x364   : > { %p1251_p8 = por %p1250_p13, %p1249_p6 }
 0x365   : > { %p1247_p2 = pneg %p1246_p0 }
 0x367   : > { %p1252_p3 = pnand %p1251_p8, %p1247_p2 }
 0x369   : > { %1255 = shalt.err (!%p1252_p3)
}
 0x36a   : > { %1078 = dma.vmem_to_hbm [thread:$0]  (%p1643_p7), %s848_s20, 128, %s845_s19, %s834_s1  }
 0x36b PF: > { %s859_s22 = sand.u32 1, %s1286_s24   ;;  %p1644_p4 = scmp.ne.s32.totalorder %s1633_s14, 0 }
 0x36c   : > { %p1645_p11 = scmp.ge.s32.totalorder %s1298_s27, 2  ;;  %s860_s17 = scalar_lea.sflag [#allocation4], %s859_s22 }
 0x36e   : > { %p1092_p12 = pnand %p1645_p11, %p1644_p4 }
 0x370   : > { %p1093_p9 = pneg %p1092_p12 }
 0x372   : > { %1281 = dma.done.wait (%p1093_p9), %s860_s17, 128  }
 0x373   : > { %1283 = vsyncadd (%p1093_p9), %s860_s17, 4294967168  ;;  %s1646_s8 = sld [smem:[#allocation12_spill]]  ;;  %p21_p10 = scmp.ge.s32.totalorder %s1374_s30, 4  }
 0x374   : > { %s1647_s24 = smov %s1290_s25  ;;  %s1648_s25 = smov %s1294_s26 }
 0x375   : > { %s1650_s27 = smov %s1374_s30  ;;  %23 = sbr.rel (!%p21_p10) target bundleno = 8 (0x8), region = 104 }
 0x379   : > { %s1649_s26 = smov %s1646_s8 }
 0x37a   :  { %865 = vsyncpa [#allocation3], 1 }
 0x37b   :  { %867 = vsyncpa [#allocation3 + $0x1], 1 }
 0x37c   :  { %868 = vsyncpa [#allocation6], 1 }
 0x37d   :  { %869 = vsyncpa [#allocation4], 1 }
 0x37e   :  { %871 = vsyncpa [#allocation4 + $0x1], 1 }

</bundles_post_ra>
